<compile_context>
chip_gen: v6e
topology: v6e:2x2x1
jax: 0.10.0
libtpu: 0.0.40
codegen_flags: <defaults>
</compile_context>

<pallas_src>
import math

import jax
import jax.numpy as jnp
from jax import lax
from jax.experimental import pallas as pl
from jax.experimental.pallas import tpu as pltpu


# ----------------------------- config ---------------------------------------
BATCH = 2
LEN_U = 8          # sequence length of u
LEN_V = 16         # sequence length of v
HIDDEN = 32


# ----------------------------- kernel ---------------------------------------
def _trilinear_att_kernel(
    u_ref,       # (B, Lu, H)       VMEM
    vt_ref,      # (B, H, Lv)       VMEM  (v pre-transposed in wrapper)
    mask_ref,    # (B, Lu + Lv)     VMEM  float 0/1 masks, [u_mask | v_mask]
    w_ref,       # (3, H)           VMEM  rows: [w1, w2, w3]
    b_ref,       # (2,)             SMEM  [b1, b2]
    out_ref,     # (B, Lu, Lv)      VMEM
):
    B, lu, H = u_ref.shape
    lv = vt_ref.shape[2]

    u = u_ref[...]                       # (B, Lu, H) f32
    vt = vt_ref[...]                     # (B, H, Lv)

    w = w_ref[...]                       # (3, H) — one tiny load, sliced below
    w1 = w[0:1, :]                       # (1, H)
    w2 = w[1:2, :]                       # (1, H)
    w3 = w[2:3, :]                       # (1, H)
    b1 = b_ref[0]                        # SMEM scalar reads
    b2 = b_ref[1]

    # part3 = (W3 ⊙ u) @ v^T as a native NN batched MXU contraction:
    # (B, Lu, H) x (B, H, Lv) -> (B, Lu, Lv); no in-kernel transpose.
    part3 = lax.dot_general(
        u * w3[None, :, :], vt,
        dimension_numbers=(((2,), (1,)), ((0,), (0,))),
        preferred_element_type=jnp.float32,
    )

    # Unpack masks with static ref slices (cheap; tiny arrays).
    u_mask = mask_ref[:, 0:lu]           # (B, Lu)
    v_mask = mask_ref[:, lu:lu + lv]     # (B, Lv)

    # part1 + b1 + u-mask penalty, fused into one per-row term (B, Lu).
    row = (
        jnp.sum(u * w1[None, :, :], axis=-1)
        + b1
        + (1.0 - u_mask) * (-10000.0)
    )

    # part2 + b2 + v-mask penalty, fused into one per-column term (B, Lv).
    col = (
        jnp.sum(vt * w2.reshape(1, H, 1), axis=1)
        + b2
        + (1.0 - v_mask) * (-10000.0)
    )

    # Single store of the whole result block.
    out_ref[...] = (part3 + row[:, :, None] + col[:, None, :]).astype(out_ref.dtype)


# ----------------------------- wrapper ---------------------------------------
def trilinear_att(u, u_mask, v, v_mask, params):
    B, Lu, H = u.shape
    _, Lv, _ = v.shape

    # Pack the five tiny parameter tensors into two operands.
    w1 = params["w1"].reshape(1, H).astype(jnp.float32)     # nn.Linear W1 weight
    w2 = params["w2"].reshape(1, H).astype(jnp.float32)     # nn.Linear W2 weight
    w3 = params["w3"].reshape(1, H).astype(jnp.float32)     # W3 parameter (1,1,H)
    w_slab = jnp.concatenate([w1, w2, w3], axis=0)          # (3, H)
    b_slab = jnp.concatenate(
        [params["b1"].reshape(1), params["b2"].reshape(1)]
    ).astype(jnp.float32)                                    # (2,)

    # Pack both masks into one operand (penalty math stays in-kernel).
    masks = jnp.concatenate(
        [u_mask.astype(jnp.float32), v_mask.astype(jnp.float32)], axis=1
    )                                                        # (B, Lu + Lv)

    # Pre-transpose v so the in-kernel contraction is MXU-native NN.
    v_t = jnp.transpose(v.astype(jnp.float32), (0, 2, 1))    # (B, H, Lv)

    out = pl.pallas_call(
        _trilinear_att_kernel,
        in_specs=[
            pl.BlockSpec(memory_space=pltpu.MemorySpace.VMEM),   # u
            pl.BlockSpec(memory_space=pltpu.MemorySpace.VMEM),   # v^T
            pl.BlockSpec(memory_space=pltpu.MemorySpace.VMEM),   # packed masks
            pl.BlockSpec(memory_space=pltpu.MemorySpace.VMEM),   # packed weights
            pl.BlockSpec(memory_space=pltpu.MemorySpace.SMEM),   # packed biases
        ],
        out_specs=pl.BlockSpec(memory_space=pltpu.MemorySpace.VMEM),
        out_shape=jax.ShapeDtypeStruct((B, Lu, Lv), jnp.float32),
    )(u.astype(jnp.float32), v_t, masks, w_slab, b_slab)
    return out


# ----------------------------- reference (plain JAX) --------------------------
def _reference(u, u_mask, v, v_mask, params):
    w1 = params["w1"].reshape(1, -1)
    w2 = params["w2"].reshape(1, -1)
    w3 = params["w3"]                                       # (1, 1, H)
    part1 = jnp.einsum("blh,oh->blo", u, w1) + params["b1"]            # (B, Lu, 1)
    part2 = jnp.transpose(
        jnp.einsum("blh,oh->blo", v, w2) + params["b2"], (0, 2, 1))    # (B, 1, Lv)
    part3 = jnp.einsum("bih,bjh->bij", w3 * u, v)                      # (B, Lu, Lv)
    um = (1.0 - u_mask.astype(jnp.float32)) * (-10000.0)               # (B, Lu)
    vm = (1.0 - v_mask.astype(jnp.float32)) * (-10000.0)               # (B, Lv)
    joint_mask = um[:, :, None] + vm[:, None, :]
    return part1 + part2 + part3 + joint_mask


# ----------------------------- main ------------------------------------------
if __name__ == "__main__":
    key = jax.random.PRNGKey(0)
    k_u, k_v, k_um, k_vm, k_w1, k_b1, k_w2, k_b2, k_w3 = jax.random.split(key, 9)

    u = jax.random.normal(k_u, (BATCH, LEN_U, HIDDEN), dtype=jnp.float32)
    v = jax.random.normal(k_v, (BATCH, LEN_V, HIDDEN), dtype=jnp.float32)

    # 0/1 masks (1 = valid token), as in the PyTorch module's u_mask / v_mask.
    u_mask = (jax.random.uniform(k_um, (BATCH, LEN_U)) > 0.25).astype(jnp.float32)
    v_mask = (jax.random.uniform(k_vm, (BATCH, LEN_V)) > 0.25).astype(jnp.float32)

    bound = 1.0 / math.sqrt(HIDDEN)
    params = {
        "w1": jax.random.uniform(k_w1, (1, HIDDEN), jnp.float32, -bound, bound),
        "b1": jax.random.uniform(k_b1, (1,), jnp.float32, -bound, bound),
        "w2": jax.random.uniform(k_w2, (1, HIDDEN), jnp.float32, -bound, bound),
        "b2": jax.random.uniform(k_b2, (1,), jnp.float32, -bound, bound),
        "w3": jax.random.uniform(k_w3, (1, 1, HIDDEN), jnp.float32, -bound, bound),
    }

    out = trilinear_att(u, u_mask, v, v_mask, params)
    jax.block_until_ready(out)

    ref = _reference(u, u_mask, v, v_mask, params)
    assert out.shape == (BATCH, LEN_U, LEN_V), f"bad shape {out.shape}"
    assert jnp.allclose(out, ref, atol=1e-3, rtol=1e-4), "trilinear attention mismatch"

    print("KERNEL_OK")
</pallas_src>

<mosaic_0001>
module attributes {stable_mosaic.version = 11 : i64} {
  func.func @_trilinear_att_kernel(%arg0: memref<2x8x32xf32, #tpu.memory_space<vmem>>, %arg1: memref<2x32x16xf32, #tpu.memory_space<vmem>>, %arg2: memref<2x24xf32, #tpu.memory_space<vmem>>, %arg3: memref<3x32xf32, #tpu.memory_space<vmem>>, %arg4: memref<2xf32, #tpu.memory_space<smem>>, %arg5: memref<2x8x16xf32, #tpu.memory_space<vmem>>) attributes {dimension_semantics = [], scalar_prefetch = 0 : i64, scratch_operands = 0 : i64, tpu.core_type = #tpu.core_type<tc>} {
    %c0 = arith.constant 0 : index
    %c0_0 = arith.constant 0 : index
    %c0_1 = arith.constant 0 : index
    %0 = vector.load %arg0[%c0, %c0_0, %c0_1] : memref<2x8x32xf32, #tpu.memory_space<vmem>>, vector<2x8x32xf32>
    %c0_2 = arith.constant 0 : index
    %c0_3 = arith.constant 0 : index
    %c0_4 = arith.constant 0 : index
    %1 = vector.load %arg1[%c0_2, %c0_3, %c0_4] : memref<2x32x16xf32, #tpu.memory_space<vmem>>, vector<2x32x16xf32>
    %c0_5 = arith.constant 0 : index
    %c0_6 = arith.constant 0 : index
    %2 = vector.load %arg3[%c0_5, %c0_6] : memref<3x32xf32, #tpu.memory_space<vmem>>, vector<3x32xf32>
    %3 = vector.extract_strided_slice %2 {offsets = [0, 0], sizes = [1, 32], strides = [1, 1]} : vector<3x32xf32> to vector<1x32xf32>
    %4 = vector.extract_strided_slice %2 {offsets = [1, 0], sizes = [1, 32], strides = [1, 1]} : vector<3x32xf32> to vector<1x32xf32>
    %5 = vector.extract_strided_slice %2 {offsets = [2, 0], sizes = [1, 32], strides = [1, 1]} : vector<3x32xf32> to vector<1x32xf32>
    %c0_7 = arith.constant 0 : index
    %6 = memref.load %arg4[%c0_7] : memref<2xf32, #tpu.memory_space<smem>>
    %c1 = arith.constant 1 : index
    %7 = memref.load %arg4[%c1] : memref<2xf32, #tpu.memory_space<smem>>
    %8 = vector.shape_cast %5 : vector<1x32xf32> to vector<1x1x32xf32>
    %9 = vector.broadcast %8 : vector<1x1x32xf32> to vector<2x8x32xf32>
    %10 = arith.mulf %0, %9 : vector<2x8x32xf32>
    %cst = arith.constant dense<0.000000e+00> : vector<2x8x16xf32>
    %11 = tpu.matmul %10, %1, %cst {dimension_numbers = #tpu.dot_dimension_numbers<[2], [1], [1], [2], [0, 0, 0, 1, 1, 2], [0], [0]>} : vector<2x8x32xf32>, vector<2x32x16xf32>, vector<2x8x16xf32> -> vector<2x8x16xf32>
    %c0_8 = arith.constant 0 : index
    %c0_9 = arith.constant 0 : index
    %12 = vector.load %arg2[%c0_8, %c0_9] : memref<2x24xf32, #tpu.memory_space<vmem>>, vector<2x8xf32>
    %c0_10 = arith.constant 0 : index
    %c8 = arith.constant 8 : index
    %13 = vector.load %arg2[%c0_10, %c8] : memref<2x24xf32, #tpu.memory_space<vmem>>, vector<2x16xf32>
    %14 = vector.shape_cast %3 : vector<1x32xf32> to vector<1x1x32xf32>
    %15 = vector.broadcast %14 : vector<1x1x32xf32> to vector<2x8x32xf32>
    %16 = arith.mulf %0, %15 : vector<2x8x32xf32>
    %cst_11 = arith.constant dense<0.000000e+00> : vector<2x8xf32>
    %17 = vector.multi_reduction <add>, %16, %cst_11 [2] : vector<2x8x32xf32> to vector<2x8xf32>
    %18 = vector.broadcast %6 : f32 to vector<2x8xf32>
    %19 = arith.addf %17, %18 : vector<2x8xf32>
    %cst_12 = arith.constant 1.000000e+00 : f32
    %20 = vector.broadcast %cst_12 : f32 to vector<2x8xf32>
    %21 = arith.subf %20, %12 : vector<2x8xf32>
    %cst_13 = arith.constant -1.000000e+04 : f32
    %22 = vector.broadcast %cst_13 : f32 to vector<2x8xf32>
    %23 = arith.mulf %21, %22 : vector<2x8xf32>
    %24 = arith.addf %19, %23 : vector<2x8xf32>
    %25 = vector.shape_cast %4 : vector<1x32xf32> to vector<1x32x1xf32>
    %26 = vector.broadcast %25 : vector<1x32x1xf32> to vector<2x32x16xf32>
    %27 = arith.mulf %1, %26 : vector<2x32x16xf32>
    %cst_14 = arith.constant dense<0.000000e+00> : vector<2x16xf32>
    %28 = vector.multi_reduction <add>, %27, %cst_14 [1] : vector<2x32x16xf32> to vector<2x16xf32>
    %29 = vector.broadcast %7 : f32 to vector<2x16xf32>
    %30 = arith.addf %28, %29 : vector<2x16xf32>
    %cst_15 = arith.constant 1.000000e+00 : f32
    %31 = vector.broadcast %cst_15 : f32 to vector<2x16xf32>
    %32 = arith.subf %31, %13 : vector<2x16xf32>
    %cst_16 = arith.constant -1.000000e+04 : f32
    %33 = vector.broadcast %cst_16 : f32 to vector<2x16xf32>
    %34 = arith.mulf %32, %33 : vector<2x16xf32>
    %35 = arith.addf %30, %34 : vector<2x16xf32>
    %36 = vector.shape_cast %24 : vector<2x8xf32> to vector<2x8x1xf32>
    %37 = vector.broadcast %36 : vector<2x8x1xf32> to vector<2x8x16xf32>
    %38 = arith.addf %11, %37 : vector<2x8x16xf32>
    %39 = vector.shape_cast %35 : vector<2x16xf32> to vector<2x1x16xf32>
    %40 = vector.broadcast %39 : vector<2x1x16xf32> to vector<2x8x16xf32>
    %41 = arith.addf %38, %40 : vector<2x8x16xf32>
    %c0_17 = arith.constant 0 : index
    %c0_18 = arith.constant 0 : index
    %c0_19 = arith.constant 0 : index
    %42 = vector.load %arg5[%c0_17, %c0_18, %c0_19] : memref<2x8x16xf32, #tpu.memory_space<vmem>>, vector<2x8x16xf32>
    tpu.vector_store %arg5[%c0_17, %c0_18, %c0_19], %41 {strides = array<i32>} : memref<2x8x16xf32, #tpu.memory_space<vmem>>, vector<2x8x16xf32>,
    return
  }
}

</mosaic_0001>

<bundles_post_ra>
// kernel: tpu_custom_call.1
= control target key start
LH: loop header
LB: loop body
LE: loop exit
PB: predicated region body
PF: predicated region fallthrough
CT: control target
= control target key end

     0   :  { %10 = vsyncpa [#allocation4], 0  ;;  %s549_s0 = inlined_call_operand.vmem [shape: f32[2,8,32], index: 0, kind: input, shape index: {}]   ;;  %s550_s1 = inlined_call_operand.vmem [shape: f32[2,32,16], index: 1, kind: input, shape index: {}]   ;;  %s551_s2 = inlined_call_operand.vmem [shape: f32[2,24], index: 2, kind: input, shape index: {}]   ;;  %s552_s3 = inlined_call_operand.vmem [shape: f32[3,32], index: 3, kind: input, shape index: {}]   ;;  %s553_s4 = inlined_call_operand.vmem [shape: f32[2], index: 4, kind: input, shape index: {}]   ;;  %s554_s5 = inlined_call_operand.hbm [shape: f32[2,8,16], index: 5, kind: output, shape index: {}]  }
   0x1   :  { %11 = vsyncpa [#allocation3], 0  ;;  %s26_s20 = sshll.u32 %s553_s4, 4  ;;  %s27_s20 = int_to_ptr.vmem [resolvable:$true] %s26_s20 }
   0x2   :  { %s387_s21 = scalar_lea.vmem %s27_s20, 16  ;;  %p392_p1 = scmp.lt.s32.totalorder %s27_s20, %s27_s20 }
   0x3   :  { %p388_p0 = scmp.ne.s32.totalorder %s27_s20, %s387_s21  ;;  %p393_p2 = scmp.lt.s32.totalorder %s387_s21, %s387_s21 }
   0x5   :  { %p394_p3 = por %p393_p2, %p392_p1 }
   0x7   :  { %p395_p4 = pnand %p394_p3, %p388_p0 }
   0x9   :  { %398 = shalt.err (!%p395_p4)
}
   0xa   :  { %s423_s22 = smov [#allocation2]  }
   0xb   :  { %29 = dma.vmem_to_smem %s27_s20, 16, %s423_s22, [#allocation4]  }
   0xc   :  { %419 = dma.done.wait [#allocation4], 16  }
   0xd   :  { %420 = vsyncadd [#allocation4], 4294967280 }
   0xe   :  { %33 = sfence }
   0xf   :  { %v47_v0 = vlaneseq  ;;  %v53_v1 = vld [vmem:[%s551_s2] sm:$0x3]  ;;  %v424_v2 = vmov 0.0   ;;  %v470_v3 = vld [vmem:[%s550_s1 + $0x18] sm:$0xff]  ;;  %v475_v4 = vld [vmem:[%s550_s1 + $0x10] sm:$0xff]  ;;  %vm425_vm0 = vmmov 0  }
  0x10   :  { %355 = vmatprep.subr.mxu0 %v424_v2  ;;  %366 = vmatprep.subr.mxu1 %v424_v2  ;;  %v70_v6 = vsub.f32 1.0, %v53_v1  ;;  %v481_v7 = vld [vmem:[%s550_s1 + $0x38] sm:$0xff]  ;;  %v44_v8 = vld [vmem:[%s552_s3] sm:$0x7]  ;;  %v490_v9 = vld [vmem:[%s550_s1 + $0x8] sm:$0xff]  ;;  %vm60_vm1 = vcmask 261120  }
  0x11   :  { %v48_v5 = vshrl.u32 %v47_v0, 7  ;;  %356 = vmatpush3.msra.mxu0 %v470_v3  ;;  %363 = vmatprep.mubr.msk.f32.mxu0 %vm425_vm0, %v424_v2  ;;  %v496_v10 = vld [vmem:[%s550_s1 + $0x30] sm:$0xff]  ;;  %v34_v15 = vld [vmem:[%s549_s0] sm:$0xff]  ;;  %v35_v16 = vld [vmem:[%s549_s0 + $0x8] sm:$0xff]  ;;  %v426_v31 = vmov 0   ;;  %s45_s18 = sld [smem:[#allocation2]] }
  0x12   :  { %357 = vmatprep.subr.mxu0 %v424_v2  ;;  %367 = vmatpush3.msra.mxu1 %v481_v7  ;;  %v71_v13 = vmul.f32 -10000.0, %v70_v6  ;;  %v514_v20 = vld [vmem:[%s550_s1] sm:$0xff]  ;;  %v41_v21 = vld [vmem:[%s550_s1 + $0x28] sm:$0xff]  ;;  %vm118_vm2 = vcmask 130048   ;;  %s342_s19 = sld [smem:[#allocation2 + $0x1]]  ;;  %s428_s20 = smov [#allocation5]  }
  0x13   :  { %v49_v11 = vsub.s32 2, %v48_v5  ;;  %v498_v12 = vsub.s32 0, %v48_v5  ;;  %v82_v14 = vsub.s32 1, %v48_v5  ;;  %358 = vmatpush3.msra.mxu0 %v475_v4  ;;  %368 = vmatprep.subr.mxu1 %v424_v2  ;;  %v40_v26 = vld [vmem:[%s550_s1 + $0x20] sm:$0xff]  ;;  %s427_s1 = smov 120   ;;  %s330_s21 = sshll.u32 %s428_s20, 4  ;;  %s331_s21 = int_to_ptr.vmem [resolvable:$true] %s330_s21 }
  0x14   :  { %359 = vmatprep.subr.mxu0 %v424_v2  ;;  %369 = vmatpush3.msra.mxu1 %v496_v10  ;;  %v148_v32 = vrot.slane %v71_v13, 1  ;;  %s399_s22 = scalar_lea.vmem %s331_s21, 256  ;;  %p404_p6 = scmp.lt.s32.totalorder %s331_s21, %s331_s21 }
  0x15   :  { %v50_v17 = vrot.slane %v44_v8, %v49_v11  ;;  %v57_v18 = vrot.slane %v44_v8, %v498_v12  ;;  %v76_v19 = vrot.slane %v71_v13, %v498_v12  ;;  %360 = vmatpush3.msra.mxu0 %v490_v9  ;;  %370 = vmatprep.subr.mxu1 %v424_v2  ;;  %p400_p5 = scmp.ne.s32.totalorder %s331_s21, %s399_s22  ;;  %p405_p7 = scmp.lt.s32.totalorder %s399_s22, %s399_s22 }
  0x16   :  { %361 = vmatprep.subr.mxu0 %v424_v2  ;;  %v83_v25 = vrot.slane %v71_v13, %v82_v14  ;;  %371 = vmatpush3.msra.mxu1 %v41_v21  ;;  %v94_v30 = vrot.slane %v44_v8, %v82_v14 }
  0x17   :  { %v58_v22 = vmul.f32 %v57_v18, %v34_v15  ;;  %v51_v23 = vmul.f32 %v50_v17, %v34_v15  ;;  %v59_v24 = vmul.f32 %v57_v18, %v35_v16  ;;  %78 = vbcast.lane.b32.xlu1 %v76_v19, 256  ;;  %v52_v27 = vmul.f32 %v50_v17, %v35_v16  ;;  %p406_p8 = por %p405_p7, %p404_p6 }
  0x18   :  { %362 = vmatpush3.msra.mxu0 %v514_v20  ;;  %372 = vmatprep.subr.mxu1 %v424_v2  ;;  %v67_v33 = vstv %s45_s18  ;;  %v145_v19 = vstv %s342_s19 }
  0x19   :  { %v61_v28 = vsel %vm60_vm1, %v58_v22, 0.0  ;;  %364 = vmatmul.mubr.msk.f32.vlgmr.msra.gmra.mxu0 %vm60_vm1, %v51_v23  ;;  %373 = vmatpush3.msra.mxu1 %v40_v26  ;;  %v64_v29 = vsel %vm60_vm1, %v59_v24, 0.0  ;;  %p407_p9 = pnand %p406_p8, %p400_p5 }
  0x1a   :  { %62 = vadd.xlane.f32.xlu0 %v61_v28  ;;  %374 = vmatprep.mubr.msk.f32.mxu1 %vm425_vm0, %v424_v2 }
  0x1b   :  { %85 = vbcast.lane.b32.xlu1 %v83_v25, 256  ;;  %375 = vmatmul.mubr.msk.f32.vlgmr.msra.gmra.mxu1 %vm60_vm1, %v52_v27 }
  0x1c   :  { %386 = vset.pattern.permute.xlu0 %v426_v31  ;;  %385 = vset.pattern.permute.xlu1 %v426_v31 }
  0x1e   :  { %65 = vadd.xlane.f32.xlu0 %v64_v29 }
  0x1f   :  { %100 = vbcast.lane.b32.xlu1 %v94_v30, 264 }
  0x23   :  { %104 = vbcast.lane.b32.xlu1 %v94_v30, 272 }
  0x27   :  { %108 = vbcast.lane.b32.xlu1 %v94_v30, 280 }
  0x34   :  { %96 = vbcast.lane.b32.xlu0 %v94_v30, 256 }
  0x38   :  { %151 = vrot.lane.b32.xlu0 %v148_v32, %s427_s1 }
  0x89   :  { %v79_v34 = vpop.permute.xlu1 %78 }
  0x8d   :  { %v86_v39 = vpop.permute.xlu1 %85 }
  0x91   :  { %v101_v46 = vpop.permute.xlu1 %100 }
  0x92   :  { %v115_v49 = vmul.f32 %v101_v46, %v41_v21  ;;  %v111_v58 = vmul.f32 %v101_v46, %v490_v9 }
  0x94   :  { %v133_v51 = vsel %vm118_vm2, %v115_v49, 0.0  ;;  %v120_v62 = vsel %vm118_vm2, %v111_v58, 0.0 }
  0x95   :  { %v105_v48 = vpop.permute.xlu1 %104 }
  0x96   :  { %v116_v52 = vmul.f32 %v105_v48, %v496_v10  ;;  %v112_v63 = vmul.f32 %v105_v48, %v475_v4 }
  0x98   :  { %v135_v56 = vsel %vm118_vm2, %v116_v52, 0.0  ;;  %v122_v5 = vsel %vm118_vm2, %v112_v63, 0.0 }
  0x99   :  { %v109_v54 = vpop.permute.xlu1 %108 }
  0x9a   :  { %v117_v57 = vmul.f32 %v109_v54, %v481_v7  ;;  %v113_v6 = vmul.f32 %v109_v54, %v470_v3 }
  0x9c   :  { %v137_v61 = vsel %vm118_vm2, %v117_v57, 0.0  ;;  %v124_v9 = vsel %vm118_vm2, %v113_v6, 0.0 }
  0xa3   :  { %v63_v35 = vpop.xlane.xlu0 %62 }
  0xa4   :  { %v68_v36 = vadd.f32 %v67_v33, %v63_v35 }
  0xa6   :  { %v89_v37 = vadd.f32 %v79_v34, %v68_v36 }
  0xa7   :  { %v66_v38 = vpop.xlane.xlu0 %65 }
  0xa8   :  { %v69_v40 = vadd.f32 %v67_v33, %v66_v38  ;;  %159 = vperm.xlu1 %385, %v89_v37  }
  0xaa   :  { %v90_v41 = vadd.f32 %v86_v39, %v69_v40 }
  0xab   :  { %v97_v47 = vpop.permute.xlu0 %96 }
  0xac   :  { %164 = vperm.xlu1 %385, %v90_v41   ;;  %v114_v50 = vmul.f32 %v97_v47, %v40_v26  ;;  %v110_v59 = vmul.f32 %v97_v47, %v514_v20 }
  0xae   :  { %v132_v53 = vsel %vm118_vm2, %v114_v50, 0.0  ;;  %v119_v0 = vsel %vm118_vm2, %v110_v59, 0.0 }
  0xaf   :  { %v134_v55 = vadd.f32 %v133_v51, %v132_v53  ;;  %v121_v2 = vadd.f32 %v120_v62, %v119_v0  ;;  %v152_v22 = vpop.permute.xlu0 %151 }
  0xb0   :  { %149 = vrot.lane.b32.xlu1 %v71_v13, %s427_s1 }
  0xb1   :  { %v136_v60 = vadd.f32 %v135_v56, %v134_v55  ;;  %v123_v8 = vadd.f32 %v122_v5, %v121_v2 }
  0xb3   :  { %v138_v1 = vadd.f32 %v137_v61, %v136_v60  ;;  %v125_v11 = vadd.f32 %v124_v9, %v123_v8 }
  0xb5   :  { %v139_v7 = vrot.slane %v138_v1, 4  ;;  %v126_v14 = vrot.slane %v125_v11, 4 }
  0xb7   :  { %v140_v10 = vadd.f32 %v139_v7, %v138_v1  ;;  %v127_v16 = vadd.f32 %v126_v14, %v125_v11 }
  0xb9   :  { %v141_v13 = vrot.slane %v140_v10, 2  ;;  %v128_v17 = vrot.slane %v127_v16, 2 }
  0xbb   :  { %v142_v15 = vadd.f32 %v141_v13, %v140_v10  ;;  %v129_v20 = vadd.f32 %v128_v17, %v127_v16 }
  0xbd   :  { %v143_v4 = vrot.slane %v142_v15, 1  ;;  %v130_v23 = vrot.slane %v129_v20, 1 }
  0xbf   :  { %v144_v18 = vadd.f32 %v143_v4, %v142_v15  ;;  %v131_v25 = vadd.f32 %v130_v23, %v129_v20 }
  0xc1   :  { %v147_v21 = vadd.f32 %v145_v19, %v144_v18  ;;  %v146_v30 = vadd.f32 %v145_v19, %v131_v25 }
  0xc3   :  { %v156_v24 = vadd.f32 %v152_v22, %v147_v21 }
  0xc5   :  { %v320_v27 = vrot.slane %v156_v24, %v498_v12 }
  0xd9   :  { %v236_v42 = vpop.f32.mrf.mxu0 }
  0xdb   :  { %v365_v43 = vpop.f32.mrf.mxu0  ;;  %v309_v44 = vpop.f32.mrf.mxu1 }
  0xdd   :  { %v376_v45 = vpop.f32.mrf.mxu1 }
 0x123   :  { %v160_v3 = vpop.permute.xlu1 %159 }
 0x124   :  { %v237_v33 = vadd.f32 %v236_v42, %v160_v3 }
 0x127   :  { %v165_v26 = vpop.permute.xlu1 %164 }
 0x128   :  { %v310_v28 = vadd.f32 %v309_v44, %v165_v26 }
 0x12a   :  { %v322_v29 = vadd.f32 %v320_v27, %v310_v28 }
 0x12b   :  { %v150_v31 = vpop.permute.xlu1 %149 }
 0x12c   :  { %324 = vst.msk [vmem:[#allocation5 + $0x8] sm:$0xff] %vm118_vm2, %v322_v29  ;;  %v155_v32 = vadd.f32 %v150_v31, %v146_v30 }
 0x12e   :  { %v316_v34 = vrot.slane %v155_v32, %v498_v12 }
 0x130   :  { %v321_v35 = vadd.f32 %v316_v34, %v237_v33 }
 0x132   :  { %323 = vst.msk [vmem:[#allocation5] sm:$0xff] %vm118_vm2, %v321_v35 }
 0x133   :  { %410 = shalt.err (!%p407_p9)
}
 0x134   :  { %s429_s23 = smov 128   ;;  %s430_s24 = smov 8  }
 0x135   :  { %336 = dma.vmem_to_hbm [thread:$0]  %s331_s21, 256, %s554_s5, [#allocation3], %s429_s23, %s429_s23, %s430_s24  }
 0x136   :  { %421 = dma.done.wait [#allocation3], 256  }
 0x137   :  { %422 = vsyncadd [#allocation3], 4294967040 }
 0x138   :  { %340 = vsyncpa [#allocation3], 1 }
 0x139   :  { %341 = vsyncpa [#allocation4], 1 }

</bundles_post_ra>
